<compile_context>
chip_gen: v7x
topology: tpu7x:2x2x1
jax: 0.10.0
libtpu: 0.0.40
codegen_flags: <defaults>
</compile_context>

<pallas_src>
import functools

import jax
import jax.numpy as jnp
from jax.experimental import pallas as pl
from jax.experimental.pallas import tpu as pltpu


# ----------------------------- Fused Pallas kernel ------------------------------

def _fused_appnp_kernel(*refs, num_layers, K, alpha):
    """Fused MLP (Linear + bias + ReLU per layer) followed by K-step APPNP propagation.

    Transposed layout (features on sublanes, nodes on lanes). All whole-array VMEM blocks:
      refs[0]                      : x_T     (Fin, N)   float32
      refs[1 + 2*i], refs[2 + 2*i] : w_i (Fout_i, Fin_i) bf16 (torch layout), b_i (Fout_i, 1) f32
      refs[1 + 2*num_layers]       : a_hat_T (N, N)     bf16, [source, target],
                                     already scaled by (1 - alpha)
      refs[2 + 2*num_layers]       : output  (Fout, N)  float32
    """
    x_ref = refs[0]
    a_ref = refs[1 + 2 * num_layers]
    o_ref = refs[2 + 2 * num_layers]

    # --- MLP: dropout is identity in eval mode; linear -> bias -> ReLU per layer ---
    h = x_ref[...]                                                    # (Fin, N) f32
    for i in range(num_layers):
        w = refs[1 + 2 * i][...]                                      # (Fout, Fin) bf16
        b = refs[2 + 2 * i][...]                                      # (Fout, 1)   f32
        h = jnp.dot(w, h.astype(jnp.bfloat16),
                    preferred_element_type=jnp.float32) + b           # bias bcasts over lanes
        h = jnp.maximum(h, 0.0)                                       # ReLU (f32 VPU)

    # --- APPNP: x_{k+1} = (1-alpha) * A_hat @ x_k + alpha * h,   x_0 = h ---
    # a_ref already carries the (1-alpha) factor (folded at build time).
    a = a_ref[...]                                                    # (N, N) bf16
    ah = alpha * h                                                    # hoisted teleport term, f32
    x = h
    for _ in range(K):                       # fully unrolled: K is static and small
        # x_T @ A_hat_T  ==  ((1-alpha) * A_hat @ x)^T ; bf16 inputs, f32 accumulation.
        x = jnp.dot(x.astype(jnp.bfloat16), a,
                    preferred_element_type=jnp.float32) + ah
    o_ref[...] = x                                                    # (Fout, N), lane-dense over N


# ------------------------------ JAX glue ---------------------------------------

def gcn_norm_dense_t(edge_index, num_nodes, alpha):
    """(1-alpha)-scaled, transposed GCN-normalized adjacency, in bfloat16.

    Returns A_hat_T with A_hat_T[source, target] = (1-alpha) * d^{-1/2}[t] * A[t,s] * d^{-1/2}[s].
    Matches PyG gcn_norm: duplicate edges accumulate; self-loops added only for nodes that
    do not already have one (existing self-loop weights are kept).
    edge_index: (2, E) int32, row 0 = source, row 1 = target.
    """
    src, dst = edge_index[0], edge_index[1]
    a = jnp.zeros((num_nodes, num_nodes), dtype=jnp.float32)
    a = a.at[src, dst].add(1.0)                       # transposed layout [source, target]
    idx = jnp.arange(num_nodes)
    diag = jnp.diagonal(a)
    a = a.at[idx, idx].set(jnp.where(diag > 0, diag, 1.0))   # add_remaining_self_loops
    deg = a.sum(axis=0)                               # in-degree per target node
    d_inv_sqrt = jnp.where(deg > 0, 1.0 / jnp.sqrt(deg), 0.0)
    a_hat_t = d_inv_sqrt[:, None] * a * d_inv_sqrt[None, :]
    return ((1.0 - alpha) * a_hat_t).astype(jnp.bfloat16)    # fold teleport scale, bf16 MXU path


def build_layer_dims(in_channels, out_channels, num_layers, n_units):
    """Mirror build_multi_layers(model=Linear, ...) layer dimensions exactly."""
    if num_layers == 1:
        return [(in_channels, out_channels)]
    dims = [(in_channels, n_units[0])]
    for i in range(1, num_layers - 1):
        if i == num_layers - 2:
            dims.append((n_units[i - 1], out_channels))
        else:
            dims.append((n_units[i - 1], n_units[i]))
    return dims


def init_linear_params(key, fan_in, fan_out):
    """nn.Linear.reset_parameters-style init. W stored in torch layout (fan_out, fan_in)."""
    kw, kb = jax.random.split(key)
    bound = (1.0 / fan_in) ** 0.5
    w = jax.random.uniform(kw, (fan_out, fan_in), jnp.float32, -bound, bound)
    b = jax.random.uniform(kb, (fan_out, 1), jnp.float32, -bound, bound)
    return w, b


def appnp_model_forward(x, a_hat_t, params, K, alpha):
    """Full forward: MLP (+ReLU) layers then APPNP propagation, all in one pallas_call.

    x: (N, Fin) f32 node features. a_hat_t: (N, N) bf16, transposed [source, target],
    pre-scaled by (1 - alpha) and built ONCE per graph (not per call).
    """
    # TODO(synk): dropout is identity in eval mode (training=False); not implemented in-kernel.
    N = x.shape[0]
    num_layers = len(params)
    f_out = params[-1][0].shape[0]

    kernel = functools.partial(
        _fused_appnp_kernel, num_layers=num_layers, K=int(K), alpha=float(alpha))

    x_t = x.T                                  # (Fin, N): features on sublanes, nodes on lanes
    inputs = [x_t]
    in_specs = [pl.BlockSpec(x_t.shape, lambda: (0, 0))]
    for (w, b) in params:
        w_bf = w.astype(jnp.bfloat16)          # bf16 weights; f32 accumulation in-kernel
        inputs.extend([w_bf, b])
        in_specs.append(pl.BlockSpec(w_bf.shape, lambda: (0, 0)))
        in_specs.append(pl.BlockSpec(b.shape, lambda: (0, 0)))
    inputs.append(a_hat_t)
    in_specs.append(pl.BlockSpec((N, N), lambda: (0, 0)))

    out_t = pl.pallas_call(
        kernel,
        out_shape=jax.ShapeDtypeStruct((f_out, N), jnp.float32),
        in_specs=in_specs,
        out_specs=pl.BlockSpec((f_out, N), lambda: (0, 0)),
        compiler_params=pltpu.CompilerParams(vmem_limit_bytes=32 * 1024 * 1024),
    )(*inputs)
    return out_t.T                             # layout plumbing back to module's (N, Fout)


# --------------------------------- main -----------------------------------------

if __name__ == "__main__":
    key = jax.random.PRNGKey(0)

    # Hyperparameters consistent with the module (activation='relu').
    N = 32                 # number of graph nodes
    in_channels = 16
    n_units = [32]
    out_channels = 8
    num_layers = 3         # build_multi_layers(num_layers=3, n_units=[32]) -> Linear(16,32), Linear(32,8)
    K = 10
    alpha = 0.1

    k_x, k_e1, k_e2, k_params = jax.random.split(key, 4)

    # Node features.
    x = jax.random.normal(k_x, (N, in_channels), dtype=jnp.float32)

    # Random undirected edge_index (2, E).
    E = 64
    src = jax.random.randint(k_e1, (E,), 0, N, dtype=jnp.int32)
    dst = jax.random.randint(k_e2, (E,), 0, N, dtype=jnp.int32)
    edge_index = jnp.stack([jnp.concatenate([src, dst]),
                            jnp.concatenate([dst, src])], axis=0)

    # Linear layers per build_multi_layers semantics.
    layer_dims = build_layer_dims(in_channels, out_channels, num_layers, n_units)
    params = []
    for (fi, fo) in layer_dims:
        k_params, k_l = jax.random.split(k_params)
        params.append(init_linear_params(k_l, fi, fo))

    # Build the (1-alpha)-scaled, transposed, bf16 normalized adjacency ONCE (static per graph).
    a_hat_t = gcn_norm_dense_t(edge_index, N, alpha)

    out = appnp_model_forward(x, a_hat_t, params, K, alpha)
    out = jax.block_until_ready(out)
    assert out.shape == (N, out_channels)
    assert bool(jnp.all(jnp.isfinite(out)))
    print("KERNEL_OK")
</pallas_src>

<mosaic_0001>
module attributes {stable_mosaic.version = 11 : i64} {
  func.func @_fused_appnp_kernel(%arg0: memref<16x32xf32, #tpu.memory_space<vmem>>, %arg1: memref<32x16xbf16, #tpu.memory_space<vmem>>, %arg2: memref<32x1xf32, #tpu.memory_space<vmem>>, %arg3: memref<8x32xbf16, #tpu.memory_space<vmem>>, %arg4: memref<8x1xf32, #tpu.memory_space<vmem>>, %arg5: memref<32x32xbf16, #tpu.memory_space<vmem>>, %arg6: memref<8x32xf32, #tpu.memory_space<vmem>>) attributes {dimension_semantics = [], scalar_prefetch = 0 : i64, scratch_operands = 0 : i64, tpu.core_type = #tpu.core_type<tc>} {
    %c0 = arith.constant 0 : index
    %c0_0 = arith.constant 0 : index
    %0 = vector.load %arg0[%c0, %c0_0] : memref<16x32xf32, #tpu.memory_space<vmem>>, vector<16x32xf32>
    %c0_1 = arith.constant 0 : index
    %c0_2 = arith.constant 0 : index
    %1 = vector.load %arg1[%c0_1, %c0_2] : memref<32x16xbf16, #tpu.memory_space<vmem>>, vector<32x16xbf16>
    %c0_3 = arith.constant 0 : index
    %c0_4 = arith.constant 0 : index
    %2 = vector.load %arg2[%c0_3, %c0_4] : memref<32x1xf32, #tpu.memory_space<vmem>>, vector<32x1xf32>
    %3 = arith.truncf %0 : vector<16x32xf32> to vector<16x32xbf16>
    %cst = arith.constant dense<0.000000e+00> : vector<32x32xf32>
    %4 = tpu.matmul %1, %3, %cst {dimension_numbers = #tpu.dot_dimension_numbers<[1], [0], [0], [1], [0, 0, 1, 1], [], []>} : vector<32x16xbf16>, vector<16x32xbf16>, vector<32x32xf32> -> vector<32x32xf32>
    %5 = vector.broadcast %2 : vector<32x1xf32> to vector<32x32xf32>
    %6 = arith.addf %4, %5 : vector<32x32xf32>
    %cst_5 = arith.constant 0.000000e+00 : f32
    %7 = vector.broadcast %cst_5 : f32 to vector<32x32xf32>
    %8 = arith.maximumf %6, %7 : vector<32x32xf32>
    %c0_6 = arith.constant 0 : index
    %c0_7 = arith.constant 0 : index
    %9 = vector.load %arg3[%c0_6, %c0_7] : memref<8x32xbf16, #tpu.memory_space<vmem>>, vector<8x32xbf16>
    %c0_8 = arith.constant 0 : index
    %c0_9 = arith.constant 0 : index
    %10 = vector.load %arg4[%c0_8, %c0_9] : memref<8x1xf32, #tpu.memory_space<vmem>>, vector<8x1xf32>
    %11 = arith.truncf %8 : vector<32x32xf32> to vector<32x32xbf16>
    %cst_10 = arith.constant dense<0.000000e+00> : vector<8x32xf32>
    %12 = tpu.matmul %9, %11, %cst_10 {dimension_numbers = #tpu.dot_dimension_numbers<[1], [0], [0], [1], [0, 0, 1, 1], [], []>} : vector<8x32xbf16>, vector<32x32xbf16>, vector<8x32xf32> -> vector<8x32xf32>
    %13 = vector.broadcast %10 : vector<8x1xf32> to vector<8x32xf32>
    %14 = arith.addf %12, %13 : vector<8x32xf32>
    %cst_11 = arith.constant 0.000000e+00 : f32
    %15 = vector.broadcast %cst_11 : f32 to vector<8x32xf32>
    %16 = arith.maximumf %14, %15 : vector<8x32xf32>
    %c0_12 = arith.constant 0 : index
    %c0_13 = arith.constant 0 : index
    %17 = vector.load %arg5[%c0_12, %c0_13] : memref<32x32xbf16, #tpu.memory_space<vmem>>, vector<32x32xbf16>
    %cst_14 = arith.constant 1.000000e-01 : f32
    %18 = vector.broadcast %cst_14 : f32 to vector<8x32xf32>
    %19 = arith.mulf %18, %16 : vector<8x32xf32>
    %20 = arith.truncf %16 : vector<8x32xf32> to vector<8x32xbf16>
    %cst_15 = arith.constant dense<0.000000e+00> : vector<8x32xf32>
    %21 = tpu.matmul %20, %17, %cst_15 {dimension_numbers = #tpu.dot_dimension_numbers<[1], [0], [0], [1], [0, 0, 1, 1], [], []>} : vector<8x32xbf16>, vector<32x32xbf16>, vector<8x32xf32> -> vector<8x32xf32>
    %22 = arith.addf %21, %19 : vector<8x32xf32>
    %23 = arith.truncf %22 : vector<8x32xf32> to vector<8x32xbf16>
    %cst_16 = arith.constant dense<0.000000e+00> : vector<8x32xf32>
    %24 = tpu.matmul %23, %17, %cst_16 {dimension_numbers = #tpu.dot_dimension_numbers<[1], [0], [0], [1], [0, 0, 1, 1], [], []>} : vector<8x32xbf16>, vector<32x32xbf16>, vector<8x32xf32> -> vector<8x32xf32>
    %25 = arith.addf %24, %19 : vector<8x32xf32>
    %26 = arith.truncf %25 : vector<8x32xf32> to vector<8x32xbf16>
    %cst_17 = arith.constant dense<0.000000e+00> : vector<8x32xf32>
    %27 = tpu.matmul %26, %17, %cst_17 {dimension_numbers = #tpu.dot_dimension_numbers<[1], [0], [0], [1], [0, 0, 1, 1], [], []>} : vector<8x32xbf16>, vector<32x32xbf16>, vector<8x32xf32> -> vector<8x32xf32>
    %28 = arith.addf %27, %19 : vector<8x32xf32>
    %29 = arith.truncf %28 : vector<8x32xf32> to vector<8x32xbf16>
    %cst_18 = arith.constant dense<0.000000e+00> : vector<8x32xf32>
    %30 = tpu.matmul %29, %17, %cst_18 {dimension_numbers = #tpu.dot_dimension_numbers<[1], [0], [0], [1], [0, 0, 1, 1], [], []>} : vector<8x32xbf16>, vector<32x32xbf16>, vector<8x32xf32> -> vector<8x32xf32>
    %31 = arith.addf %30, %19 : vector<8x32xf32>
    %32 = arith.truncf %31 : vector<8x32xf32> to vector<8x32xbf16>
    %cst_19 = arith.constant dense<0.000000e+00> : vector<8x32xf32>
    %33 = tpu.matmul %32, %17, %cst_19 {dimension_numbers = #tpu.dot_dimension_numbers<[1], [0], [0], [1], [0, 0, 1, 1], [], []>} : vector<8x32xbf16>, vector<32x32xbf16>, vector<8x32xf32> -> vector<8x32xf32>
    %34 = arith.addf %33, %19 : vector<8x32xf32>
    %35 = arith.truncf %34 : vector<8x32xf32> to vector<8x32xbf16>
    %cst_20 = arith.constant dense<0.000000e+00> : vector<8x32xf32>
    %36 = tpu.matmul %35, %17, %cst_20 {dimension_numbers = #tpu.dot_dimension_numbers<[1], [0], [0], [1], [0, 0, 1, 1], [], []>} : vector<8x32xbf16>, vector<32x32xbf16>, vector<8x32xf32> -> vector<8x32xf32>
    %37 = arith.addf %36, %19 : vector<8x32xf32>
    %38 = arith.truncf %37 : vector<8x32xf32> to vector<8x32xbf16>
    %cst_21 = arith.constant dense<0.000000e+00> : vector<8x32xf32>
    %39 = tpu.matmul %38, %17, %cst_21 {dimension_numbers = #tpu.dot_dimension_numbers<[1], [0], [0], [1], [0, 0, 1, 1], [], []>} : vector<8x32xbf16>, vector<32x32xbf16>, vector<8x32xf32> -> vector<8x32xf32>
    %40 = arith.addf %39, %19 : vector<8x32xf32>
    %41 = arith.truncf %40 : vector<8x32xf32> to vector<8x32xbf16>
    %cst_22 = arith.constant dense<0.000000e+00> : vector<8x32xf32>
    %42 = tpu.matmul %41, %17, %cst_22 {dimension_numbers = #tpu.dot_dimension_numbers<[1], [0], [0], [1], [0, 0, 1, 1], [], []>} : vector<8x32xbf16>, vector<32x32xbf16>, vector<8x32xf32> -> vector<8x32xf32>
    %43 = arith.addf %42, %19 : vector<8x32xf32>
    %44 = arith.truncf %43 : vector<8x32xf32> to vector<8x32xbf16>
    %cst_23 = arith.constant dense<0.000000e+00> : vector<8x32xf32>
    %45 = tpu.matmul %44, %17, %cst_23 {dimension_numbers = #tpu.dot_dimension_numbers<[1], [0], [0], [1], [0, 0, 1, 1], [], []>} : vector<8x32xbf16>, vector<32x32xbf16>, vector<8x32xf32> -> vector<8x32xf32>
    %46 = arith.addf %45, %19 : vector<8x32xf32>
    %47 = arith.truncf %46 : vector<8x32xf32> to vector<8x32xbf16>
    %cst_24 = arith.constant dense<0.000000e+00> : vector<8x32xf32>
    %48 = tpu.matmul %47, %17, %cst_24 {dimension_numbers = #tpu.dot_dimension_numbers<[1], [0], [0], [1], [0, 0, 1, 1], [], []>} : vector<8x32xbf16>, vector<32x32xbf16>, vector<8x32xf32> -> vector<8x32xf32>
    %49 = arith.addf %48, %19 : vector<8x32xf32>
    %c0_25 = arith.constant 0 : index
    %c0_26 = arith.constant 0 : index
    %50 = vector.load %arg6[%c0_25, %c0_26] : memref<8x32xf32, #tpu.memory_space<vmem>>, vector<8x32xf32>
    tpu.vector_store %arg6[%c0_25, %c0_26], %49 {strides = array<i32>} : memref<8x32xf32, #tpu.memory_space<vmem>>, vector<8x32xf32>,
    return
  }
}

</mosaic_0001>

<bundles_post_ra>
// kernel: tpu_custom_call.1
= control target key start
LH: loop header
LB: loop body
LE: loop exit
PB: predicated region body
PF: predicated region fallthrough
CT: control target
= control target key end

     0   :  { %vm66_vm0 = vcmask 130048   ;;  %v833_v4 = vmov 0   ;;  %s1014_s0 = inlined_call_operand.vmem [shape: f32[16,32], index: 0, kind: input, shape index: {}]   ;;  %s1015_s1 = inlined_call_operand.vmem [shape: bf16[32,16], index: 1, kind: input, shape index: {}]   ;;  %s1016_s2 = inlined_call_operand.vmem [shape: f32[32,1], index: 2, kind: input, shape index: {}]   ;;  %s1017_s3 = inlined_call_operand.vmem [shape: bf16[8,32], index: 3, kind: input, shape index: {}]   ;;  %s1018_s4 = inlined_call_operand.vmem [shape: f32[8,1], index: 4, kind: input, shape index: {}]   ;;  %s1019_s5 = inlined_call_operand.vmem [shape: bf16[32,32], index: 5, kind: input, shape index: {}]   ;;  %s1020_s6 = inlined_call_operand.hbm [shape: f32[8,32], index: 6, kind: output, shape index: {}]  }
   0x1   :  { %v25_v0 = vld [vmem:[%s1014_s0] sm:$0xff]  ;;  %v26_v1 = vld [vmem:[%s1014_s0 + $0x8] sm:$0xff]  ;;  %803 = vset.pattern.permute.xlu0 %v833_v4  ;;  %804 = vset.pattern.permute.xlu1 %v833_v4  ;;  %v33_v7 = vld [vmem:[%s1016_s2 + $0x10] sm:$0xff] }
   0x2   :  { %v35_v2 = vpack.c.bf16 %v26_v1, %v25_v0  ;;  %v805_v3 = vld [vmem:[%s1015_s1] sm:$0xff]   ;;  %v806_v6 = vld [vmem:[%s1015_s1 + $0x8] sm:$0xff]   ;;  %48 = vperm.xlu1 %804, %v33_v7  }
   0x3   :  { %v31_v5 = vld [vmem:[%s1016_s2] sm:$0xff]  ;;  %707 = vmatprep.mubr.msk.bf16.mxu0 %vm66_vm0, %v805_v3  ;;  %v32_v8 = vld [vmem:[%s1016_s2 + $0x8] sm:$0xff] }
   0x4   :  { %705 = vmatprep.subr.bf16.mxu0 %v35_v2  ;;  %38 = vperm.xlu0 %803, %v31_v5  }
   0x5   :  { %706 = vmatpush3.bf16.msra.mxu0 %v35_v2 }
   0x6   :  { %11 = vsyncpa [#allocation3], 0  ;;  %v34_v9 = vld [vmem:[%s1016_s2 + $0x18] sm:$0xff]  ;;  %v127_v10 = vld [vmem:[%s1018_s4] sm:$0xff]  ;;  %v834_v11 = vmov 0.0   ;;  %vm835_vm1 = vmmov 0  }
   0x7   :  { %53 = vperm.xlu1 %804, %v34_v9   ;;  %711 = vmatprep.subr.bf16.mxu1 %v834_v11  ;;  %v910_v12 = vld [vmem:[%s1019_s5] sm:$0xff]   ;;  %vm135_vm2 = vcmask 261120   ;;  %v927_v32 = vld [vmem:[%s1019_s5 + $0x8] sm:$0xff]  }
   0x8   :  { %708 = vmatmul.mubr.msk.bf16.vlgmr.msra.gmra.mrb[0].mxu0 %vm66_vm0, %v806_v6  ;;  %43 = vperm.xlu0 %803, %v32_v8   ;;  %v126_v31 = vld [vmem:[%s1017_s3] sm:$0xf]  ;;  %s836_s3 = smov [#allocation2]  }
   0x9   :  { %719 = vmatprep.subr.bf16.mxu0 %v834_v11  ;;  %715 = vmatprep.mubr.msk.bf16.mxu1 %vm835_vm1, %v834_v11  ;;  %s644_s5 = sshll.u32 %s836_s3, 4  ;;  %s645_s5 = int_to_ptr.vmem [resolvable:$true] %s644_s5 }
   0xa   :  { %723 = vmatprep.mubr.msk.bf16.mxu0 %vm835_vm1, %v834_v11  ;;  %720 = vmatpush3.bf16.msra.mxu0 %v910_v12  ;;  %s809_s17 = scalar_lea.vmem %s645_s5, 128  ;;  %p814_p1 = scmp.lt.s32.totalorder %s645_s5, %s645_s5 }
   0xb   :  { %721 = vmatprep.subr.bf16.mxu0 %v834_v11  ;;  %p810_p0 = scmp.ne.s32.totalorder %s645_s5, %s809_s17  ;;  %p815_p2 = scmp.lt.s32.totalorder %s809_s17, %s809_s17 }
   0xc   :  { %132 = vperm.xlu0 %803, %v127_v10  }
   0xd   :  { %p816_p3 = por %p815_p2, %p814_p1 }
   0xe   :  { %722 = vmatpush3.bf16.msra.mxu0 %v927_v32 }
   0xf   :  { %735 = vmatprep.subr.bf16.mxu0 %v834_v11  ;;  %p817_p4 = pnand %p816_p3, %p810_p0 }
  0x81   :  { %v49_v13 = vpop.permute.xlu1 %48 }
  0x83   :  { %v39_v14 = vpop.permute.xlu0 %38 }
  0x86   :  { %v54_v16 = vpop.permute.xlu1 %53 }
  0x87   :  { %v44_v21 = vpop.permute.xlu0 %43 }
  0x8b   :  { %v133_v33 = vpop.permute.xlu0 %132 }
  0xdb   :  { %v709_v15 = vpop.f32.mrb[0].mxu0 }
  0xdc   :  { %v116_v17 = vadd.f32 %v709_v15, %v49_v13  ;;  %v107_v18 = vpop.f32.mrb[1].mxu0 }
  0xdd   :  { %v108_v19 = vadd.f32 %v107_v18, %v39_v14  ;;  %v710_v20 = vpop.f32.mrb[2].mxu0 }
  0xde   :  { %v119_v22 = vadd.f32 %v710_v20, %v54_v16  ;;  %v110_v23 = vpop.f32.mrb[3].mxu0  ;;  %v124_v25 = vmax.f32 %v116_v17, 0.0 }
  0xdf   :  { %v111_v24 = vadd.f32 %v110_v23, %v44_v21  ;;  %v122_v27 = vmax.f32 %v108_v19, 0.0 }
  0xe0   :  { %v125_v26 = vmax.f32 %v119_v22, 0.0 }
  0xe1   :  { %v123_v28 = vmax.f32 %v111_v24, 0.0 }
  0xe2   :  { %v129_v29 = vpack.c.bf16 %v125_v26, %v124_v25 }
  0xe3   :  { %v128_v30 = vpack.c.bf16 %v123_v28, %v122_v27 }
  0xe5   :  { %712 = vmatpush3.bf16.msra.mxu1 %v128_v30 }
  0xe6   :  { %713 = vmatprep.subr.bf16.mxu1 %v834_v11 }
  0xe9   :  { %714 = vmatpush3.bf16.msra.mxu1 %v129_v29 }
  0xea   :  { %727 = vmatprep.subr.bf16.mxu1 %v834_v11 }
  0xec   :  { %716 = vmatmul.mubr.msk.bf16.vlgmr.msra.gmra.mrb[0].mxu1 %vm135_vm2, %v126_v31 }
  0xed   :  { %728 = vmatpush3.bf16.msra.mxu1 %v910_v12  ;;  %731 = vmatprep.mubr.msk.bf16.mxu1 %vm835_vm1, %v834_v11 }
  0xee   :  { %729 = vmatprep.subr.bf16.mxu1 %v834_v11 }
  0xf1   :  { %730 = vmatpush3.bf16.msra.mxu1 %v927_v32 }
  0xf2   :  { %743 = vmatprep.subr.bf16.mxu1 %v834_v11 }
 0x1bf   :  { %v173_v34 = vpop.f32.mrb[0].mxu1 }
 0x1c0   :  { %v174_v35 = vadd.f32 %v173_v34, %v133_v33  ;;  %v717_v36 = vpop.f32.mrb[1].mxu1 }
 0x1c1   :  { %v176_v37 = vpop.f32.mrb[2].mxu1 }
 0x1c2   :  { %v179_v38 = vmax.f32 %v174_v35, 0.0  ;;  %v718_v39 = vpop.f32.mrb[3].mxu1 }
 0x1c4   :  { %v185_v40 = vpack.c.bf16 %v179_v38, %v179_v38  ;;  %v940_v41 = vmul.f32 0.1, %v179_v38 }
 0x1c6   :  { %724 = vmatmul.mubr.msk.bf16.vlgmr.msra.gmra.mrb[4].mxu0 %vm135_vm2, %v185_v40 }
 0x1c7   :  { %736 = vmatpush3.bf16.msra.mxu0 %v910_v12  ;;  %739 = vmatprep.mubr.msk.bf16.mxu0 %vm835_vm1, %v834_v11 }
 0x1c8   :  { %737 = vmatprep.subr.bf16.mxu0 %v834_v11 }
 0x1cb   :  { %738 = vmatpush3.bf16.msra.mxu0 %v927_v32 }
 0x1cc   :  { %751 = vmatprep.subr.bf16.mxu0 %v834_v11 }
 0x299   :  { %v235_v42 = vpop.f32.mrb[4].mxu0 }
 0x29a   :  { %v236_v43 = vadd.f32 %v235_v42, %v940_v41  ;;  %v725_v44 = vpop.f32.mrb[5].mxu0 }
 0x29b   :  { %v238_v45 = vpop.f32.mrb[6].mxu0 }
 0x29c   :  { %v241_v46 = vpack.c.bf16 %v236_v43, %v236_v43  ;;  %v726_v47 = vpop.f32.mrb[7].mxu0 }
 0x29e   :  { %732 = vmatmul.mubr.msk.bf16.vlgmr.msra.gmra.mrb[4].mxu1 %vm135_vm2, %v241_v46 }
 0x29f   :  { %744 = vmatpush3.bf16.msra.mxu1 %v910_v12  ;;  %747 = vmatprep.mubr.msk.bf16.mxu1 %vm835_vm1, %v834_v11 }
 0x2a0   :  { %745 = vmatprep.subr.bf16.mxu1 %v834_v11 }
 0x2a3   :  { %746 = vmatpush3.bf16.msra.mxu1 %v927_v32 }
 0x2a4   :  { %759 = vmatprep.subr.bf16.mxu1 %v834_v11 }
 0x371   :  { %v279_v48 = vpop.f32.mrb[4].mxu1 }
 0x372   :  { %v280_v49 = vadd.f32 %v279_v48, %v940_v41  ;;  %v733_v50 = vpop.f32.mrb[5].mxu1 }
 0x373   :  { %v282_v51 = vpop.f32.mrb[6].mxu1 }
 0x374   :  { %v285_v52 = vpack.c.bf16 %v280_v49, %v280_v49  ;;  %v734_v53 = vpop.f32.mrb[7].mxu1 }
 0x376   :  { %740 = vmatmul.mubr.msk.bf16.vlgmr.msra.gmra.mrb[8].mxu0 %vm135_vm2, %v285_v52 }
 0x377   :  { %752 = vmatpush3.bf16.msra.mxu0 %v910_v12  ;;  %755 = vmatprep.mubr.msk.bf16.mxu0 %vm835_vm1, %v834_v11 }
 0x378   :  { %753 = vmatprep.subr.bf16.mxu0 %v834_v11 }
 0x37b   :  { %754 = vmatpush3.bf16.msra.mxu0 %v927_v32 }
 0x37c   :  { %767 = vmatprep.subr.bf16.mxu0 %v834_v11 }
 0x449   :  { %v323_v54 = vpop.f32.mrb[8].mxu0 }
 0x44a   :  { %v324_v55 = vadd.f32 %v323_v54, %v940_v41  ;;  %v741_v56 = vpop.f32.mrb[9].mxu0 }
 0x44b   :  { %v326_v57 = vpop.f32.mrb[10].mxu0 }
 0x44c   :  { %v329_v58 = vpack.c.bf16 %v324_v55, %v324_v55  ;;  %v742_v59 = vpop.f32.mrb[11].mxu0 }
 0x44e   :  { %748 = vmatmul.mubr.msk.bf16.vlgmr.msra.gmra.mrb[8].mxu1 %vm135_vm2, %v329_v58 }
 0x44f   :  { %760 = vmatpush3.bf16.msra.mxu1 %v910_v12  ;;  %763 = vmatprep.mubr.msk.bf16.mxu1 %vm835_vm1, %v834_v11 }
 0x450   :  { %761 = vmatprep.subr.bf16.mxu1 %v834_v11 }
 0x453   :  { %762 = vmatpush3.bf16.msra.mxu1 %v927_v32 }
 0x454   :  { %775 = vmatprep.subr.bf16.mxu1 %v834_v11 }
 0x521   :  { %v367_v60 = vpop.f32.mrb[8].mxu1 }
 0x522   :  { %v368_v61 = vadd.f32 %v367_v60, %v940_v41  ;;  %v749_v62 = vpop.f32.mrb[9].mxu1 }
 0x523   :  { %v370_v63 = vpop.f32.mrb[10].mxu1 }
 0x524   :  { %v373_v0 = vpack.c.bf16 %v368_v61, %v368_v61  ;;  %v750_v1 = vpop.f32.mrb[11].mxu1 }
 0x526   :  { %756 = vmatmul.mubr.msk.bf16.vlgmr.msra.gmra.mrb[12].mxu0 %vm135_vm2, %v373_v0 }
 0x527   :  { %768 = vmatpush3.bf16.msra.mxu0 %v910_v12  ;;  %771 = vmatprep.mubr.msk.bf16.mxu0 %vm835_vm1, %v834_v11 }
 0x528   :  { %769 = vmatprep.subr.bf16.mxu0 %v834_v11 }
 0x52b   :  { %770 = vmatpush3.bf16.msra.mxu0 %v927_v32 }
 0x52c   :  { %783 = vmatprep.subr.bf16.mxu0 %v834_v11 }
 0x5f9   :  { %v411_v2 = vpop.f32.mrb[12].mxu0 }
 0x5fa   :  { %v412_v3 = vadd.f32 %v411_v2, %v940_v41  ;;  %v757_v4 = vpop.f32.mrb[13].mxu0 }
 0x5fb   :  { %v414_v5 = vpop.f32.mrb[14].mxu0 }
 0x5fc   :  { %v417_v6 = vpack.c.bf16 %v412_v3, %v412_v3  ;;  %v758_v7 = vpop.f32.mrb[15].mxu0 }
 0x5fe   :  { %764 = vmatmul.mubr.msk.bf16.vlgmr.msra.gmra.mrb[12].mxu1 %vm135_vm2, %v417_v6 }
 0x5ff   :  { %776 = vmatpush3.bf16.msra.mxu1 %v910_v12  ;;  %779 = vmatprep.mubr.msk.bf16.mxu1 %vm835_vm1, %v834_v11 }
 0x600   :  { %777 = vmatprep.subr.bf16.mxu1 %v834_v11 }
 0x603   :  { %778 = vmatpush3.bf16.msra.mxu1 %v927_v32 }
 0x604   :  { %791 = vmatprep.subr.bf16.mxu1 %v834_v11 }
 0x6d1   :  { %v455_v8 = vpop.f32.mrb[12].mxu1 }
 0x6d2   :  { %v456_v9 = vadd.f32 %v455_v8, %v940_v41  ;;  %v765_v10 = vpop.f32.mrb[13].mxu1 }
 0x6d3   :  { %v458_v13 = vpop.f32.mrb[14].mxu1 }
 0x6d4   :  { %v461_v14 = vpack.c.bf16 %v456_v9, %v456_v9  ;;  %v766_v15 = vpop.f32.mrb[15].mxu1 }
 0x6d6   :  { %772 = vmatmul.mubr.msk.bf16.vlgmr.msra.gmra.mrb[16].mxu0 %vm135_vm2, %v461_v14 }
 0x6d7   :  { %784 = vmatpush3.bf16.msra.mxu0 %v910_v12  ;;  %787 = vmatprep.mubr.msk.bf16.mxu0 %vm835_vm1, %v834_v11 }
 0x6d8   :  { %785 = vmatprep.subr.bf16.mxu0 %v834_v11 }
 0x6db   :  { %786 = vmatpush3.bf16.msra.mxu0 %v927_v32 }
 0x7a9   :  { %v499_v16 = vpop.f32.mrb[16].mxu0 }
 0x7aa   :  { %v500_v17 = vadd.f32 %v499_v16, %v940_v41  ;;  %v773_v18 = vpop.f32.mrb[17].mxu0 }
 0x7ab   :  { %v502_v19 = vpop.f32.mrb[18].mxu0 }
 0x7ac   :  { %v505_v20 = vpack.c.bf16 %v500_v17, %v500_v17  ;;  %v774_v21 = vpop.f32.mrb[19].mxu0 }
 0x7ae   :  { %780 = vmatmul.mubr.msk.bf16.vlgmr.msra.gmra.mrb[16].mxu1 %vm135_vm2, %v505_v20 }
 0x7af   :  { %792 = vmatpush3.bf16.msra.mxu1 %v910_v12  ;;  %795 = vmatprep.mubr.msk.bf16.mxu1 %vm835_vm1, %v834_v11 }
 0x7b0   :  { %793 = vmatprep.subr.bf16.mxu1 %v834_v11 }
 0x7b3   :  { %794 = vmatpush3.bf16.msra.mxu1 %v927_v32 }
 0x881   :  { %v543_v22 = vpop.f32.mrb[16].mxu1 }
 0x882   :  { %v544_v23 = vadd.f32 %v543_v22, %v940_v41  ;;  %v781_v24 = vpop.f32.mrb[17].mxu1 }
 0x883   :  { %v546_v25 = vpop.f32.mrb[18].mxu1 }
 0x884   :  { %v549_v26 = vpack.c.bf16 %v544_v23, %v544_v23  ;;  %v782_v27 = vpop.f32.mrb[19].mxu1 }
 0x886   :  { %788 = vmatmul.mubr.msk.bf16.vlgmr.msra.gmra.mrb[20].mxu0 %vm135_vm2, %v549_v26 }
 0x959   :  { %v587_v28 = vpop.f32.mrb[20].mxu0 }
 0x95a   :  { %v588_v29 = vadd.f32 %v587_v28, %v940_v41  ;;  %v789_v12 = vpop.f32.mrb[21].mxu0 }
 0x95b   :  { %v590_v30 = vpop.f32.mrb[22].mxu0 }
 0x95c   :  { %v593_v31 = vpack.c.bf16 %v588_v29, %v588_v29  ;;  %v790_v33 = vpop.f32.mrb[23].mxu0 }
 0x95e   :  { %796 = vmatmul.mubr.msk.bf16.vlgmr.msra.gmra.mrb[20].mxu1 %vm135_vm2, %v593_v31 }
 0xa31   :  { %v631_v11 = vpop.f32.mrb[20].mxu1 }
 0xa32   :  { %v632_v32 = vadd.f32 %v631_v11, %v940_v41  ;;  %v797_v34 = vpop.f32.mrb[21].mxu1 }
 0xa33   :  { %v634_v35 = vpop.f32.mrb[22].mxu1 }
 0xa34   :  { %637 = vst.msk [vmem:[#allocation2] sm:$0xff] %vm135_vm2, %v632_v32  ;;  %v798_v36 = vpop.f32.mrb[23].mxu1 }
 0xa35   :  { %820 = shalt.err (!%p817_p4)
}
 0xa36   :  { %s821_s20 = scalar_lea.hbm %s1020_s6, 128 }
 0xa37   :  { %p822_p5 = scmp.ne.s32.totalorder %s1020_s6, %s821_s20  ;;  %p825_p6 = scmp.lt.u32.totalorder %s821_s20, %s1020_s6 }
 0xa39   :  { %p827_p7 = pnand %p825_p6, %p822_p5 }
 0xa3b   :  { %830 = shalt.err (!%p827_p7)
}
 0xa3c   :  { %647 = dma.vmem_to_hbm [thread:$0]  %s645_s5, 128, %s1020_s6, [#allocation3]  }
 0xa3d   :  { %831 = dma.done.wait [#allocation3], 128  }
 0xa3e   :  { %832 = vsyncadd [#allocation3], 4294967168 }
 0xa3f   :  { %651 = vsyncpa [#allocation3], 1 }

</bundles_post_ra>
